<compile_context>
chip_gen: v6e
topology: v6e:2x2x1
jax: 0.10.0
libtpu: 0.0.40
codegen_flags: <defaults>
</compile_context>

<pallas_src>
import jax
import jax.numpy as jnp
from jax.experimental import pallas as pl
from jax.experimental.pallas import tpu as pltpu

_COMPUTE_DTYPE = jnp.float32
# Below this many elements a single fused XLA FMA beats any pallas_call
# (launch + ~0.35us/step overhead dwarfs a few thousand VPU FMAs).
_PALLAS_MIN_N = 64 * 1024
# Largest block: (1024, 1024) f32 = 4 MiB.  Input + output double-buffered is
# 16 MiB, safe on every generation once the scoped-VMEM limit is raised.
_MAX_BLOCK_ROWS = 1024
_VMEM_LIMIT_BYTES = 48 * 1024 * 1024


def _linear_kernel(x_ref, wb_ref, o_ref):
    # x_ref / o_ref: (block_rows, lanes) VMEM tiles.
    # wb_ref: (2,) f32 in SMEM -- wb_ref[0] = weight, wb_ref[1] = bias.
    # Pure VPU FMA; routing a 1x1 "matmul" through the MXU would waste it.
    o_ref[...] = x_ref[...] * wb_ref[0] + wb_ref[1]


def _pick_block_rows(rows):
    """Rows per block: aim for >=4 pipelined grid steps (keeps DMA pipelined
    and gives both v7x TensorCores work), capped at _MAX_BLOCK_ROWS
    (4 MiB f32 blocks at 1024 lanes)."""
    target = pl.cdiv(rows, 4)
    return max(8, min(_MAX_BLOCK_ROWS, 8 * pl.cdiv(target, 8)))


def _linear_pallas(flat, wb, lanes):
    """y = flat * w + b over a lane-dense (rows, lanes) view.

    flat.size must be a multiple of `lanes`, so the reshape is a free,
    layout-preserving view -- no padding / extra HBM copies of x or y.
    """
    n = flat.shape[0]
    rows = n // lanes
    block_rows = _pick_block_rows(rows)
    x2 = flat.reshape(rows, lanes)
    # Partial last block (rows % block_rows != 0) is fine for a pure
    # elementwise op: out-of-bounds rows read garbage and their writes are
    # discarded by Pallas.
    grid = (pl.cdiv(rows, block_rows),)

    y2 = pl.pallas_call(
        _linear_kernel,
        out_shape=jax.ShapeDtypeStruct((rows, lanes), flat.dtype),
        grid=grid,
        in_specs=[
            # TODO(synk): if xprof ever shows exposed input DMA, sweep
            # pipeline_mode=pl.Buffered(3) on this spec.
            pl.BlockSpec((block_rows, lanes), lambda i: (i, 0)),
            pl.BlockSpec(memory_space=pltpu.MemorySpace.SMEM),
        ],
        out_specs=pl.BlockSpec((block_rows, lanes), lambda i: (i, 0)),
        compiler_params=pltpu.CompilerParams(
            dimension_semantics=("parallel",),
            vmem_limit_bytes=_VMEM_LIMIT_BYTES,
        ),
        cost_estimate=pl.CostEstimate(
            flops=2 * n, transcendentals=0, bytes_accessed=2 * n * 4),
    )(x2, wb)

    return y2.reshape(n)


def linear_forward(x, weight, bias):
    """y = x @ W^T + b for nn.Linear(1, 1):  y[i, 0] = x[i, 0] * w + b.

    x: (N, 1), weight: (1, 1), bias: (1,)  ->  (N, 1) float32.

    TODO(synk): PyTorch module is .double(); computed here in float32 since
    TPU Pallas has no f64 vector path.
    """
    n = x.shape[0]
    flat = x.reshape(n).astype(_COMPUTE_DTYPE)            # (N,1)->(N,) is free
    wb = jnp.concatenate(
        [weight.reshape(-1), bias.reshape(-1)]).astype(_COMPUTE_DTYPE)  # (2,)

    # Tiny batches: one fused XLA FMA; pallas_call overhead would dominate.
    if n < _PALLAS_MIN_N:
        return (flat * wb[0] + wb[1]).reshape(n, 1)

    # Lane-dense layout: widest lane count that divides N, so the
    # (rows, lanes) reshape is a free view (no pad / slice copies).
    lanes = 1024 if n % 1024 == 0 else 128
    if n % lanes == 0:
        return _linear_pallas(flat, wb, lanes).reshape(n, 1)

    # Ragged N (rare): Pallas on the 128-divisible bulk, <128-elem tail in XLA.
    bulk = (n // 128) * 128
    y_bulk = _linear_pallas(flat[:bulk], wb, 128)
    y_tail = flat[bulk:] * wb[0] + wb[1]
    return jnp.concatenate([y_bulk, y_tail]).reshape(n, 1)


if __name__ == "__main__":
    key = jax.random.PRNGKey(0)
    kx1, kx2, kx3, kw, kb = jax.random.split(key, 5)

    # Deterministic params mimicking nn.Linear(1, 1) init.
    weight = jax.random.uniform(kw, (1, 1), minval=-1.0, maxval=1.0,
                                dtype=jnp.float32)
    bias = jax.random.uniform(kb, (1,), minval=-1.0, maxval=1.0,
                              dtype=jnp.float32)

    def ref(x):
        return x @ weight.T + bias

    # Case 1: literal tiny module usage (N=8) -> XLA fast-path dispatch.
    x1 = jax.random.normal(kx1, (8, 1), dtype=jnp.float32)
    y1 = linear_forward(x1, weight, bias)
    jax.block_until_ready(y1)
    assert y1.shape == (8, 1)
    assert jnp.allclose(y1, ref(x1), atol=1e-6), "tiny-N mismatch"

    # Case 2: lane-divisible batch -> zero-copy Pallas path.
    # N=262144 -> lanes=1024, rows=256, block_rows=64, grid=(4,).
    x2 = jax.random.normal(kx2, (262144, 1), dtype=jnp.float32)
    y2 = linear_forward(x2, weight, bias)
    jax.block_until_ready(y2)
    assert y2.shape == (262144, 1)
    assert jnp.allclose(y2, ref(x2), atol=1e-6), "pallas-path mismatch"

    # Case 3: ragged batch -> Pallas bulk (65536 elems, lanes=128, grid=(4,))
    # plus a 100-element XLA tail.
    x3 = jax.random.normal(kx3, (65636, 1), dtype=jnp.float32)
    y3 = linear_forward(x3, weight, bias)
    jax.block_until_ready(y3)
    assert y3.shape == (65636, 1)
    assert jnp.allclose(y3, ref(x3), atol=1e-6), "ragged-path mismatch"

    print("KERNEL_OK")
</pallas_src>

<mosaic_0001>
module attributes {stable_mosaic.version = 11 : i64} {
  func.func @_linear_kernel(%arg0: i32, %arg1: memref<64x1024xf32, #tpu.memory_space<vmem>>, %arg2: memref<2xf32, #tpu.memory_space<smem>>, %arg3: memref<64x1024xf32, #tpu.memory_space<vmem>>) attributes {dimension_semantics = [#tpu.dimension_semantics<parallel>], iteration_bounds = array<i64: 4>, scalar_prefetch = 0 : i64, scratch_operands = 0 : i64, tpu.core_type = #tpu.core_type<tc>, window_params = [{transform_indices = @transform_0, window_bounds = array<i64: 64, 1024>}, {transform_indices = @transform_1, window_bounds = array<i64: 2>}, {transform_indices = @transform_2, window_bounds = array<i64: 64, 1024>}]} {
    %c0 = arith.constant 0 : index
    %c0_0 = arith.constant 0 : index
    %0 = vector.load %arg1[%c0, %c0_0] : memref<64x1024xf32, #tpu.memory_space<vmem>>, vector<64x1024xf32>
    %c0_1 = arith.constant 0 : index
    %1 = memref.load %arg2[%c0_1] : memref<2xf32, #tpu.memory_space<smem>>
    %2 = vector.broadcast %1 : f32 to vector<64x1024xf32>
    %3 = arith.mulf %0, %2 : vector<64x1024xf32>
    %c1 = arith.constant 1 : index
    %4 = memref.load %arg2[%c1] : memref<2xf32, #tpu.memory_space<smem>>
    %5 = vector.broadcast %4 : f32 to vector<64x1024xf32>
    %6 = arith.addf %3, %5 : vector<64x1024xf32>
    %c0_2 = arith.constant 0 : index
    %c0_3 = arith.constant 0 : index
    %7 = vector.load %arg3[%c0_2, %c0_3] : memref<64x1024xf32, #tpu.memory_space<vmem>>, vector<64x1024xf32>
    tpu.vector_store %arg3[%c0_2, %c0_3], %6 {strides = array<i32>} : memref<64x1024xf32, #tpu.memory_space<vmem>>, vector<64x1024xf32>,
    return
  }
  func.func @transform_0(%arg0: i32) -> (i32, i32) {
    %c0_i32 = arith.constant 0 : i32
    %c0_i32_0 = arith.constant 0 : i32
    return %arg0, %c0_i32 : i32, i32
  }
  func.func @transform_1(%arg0: i32) -> i32 {
    %c0_i32 = arith.constant 0 : i32
    %c0_i32_0 = arith.constant 0 : i32
    return %c0_i32 : i32
  }
  func.func @transform_2(%arg0: i32) -> (i32, i32) {
    %c0_i32 = arith.constant 0 : i32
    %c0_i32_0 = arith.constant 0 : i32
    return %arg0, %c0_i32 : i32, i32
  }
}

</mosaic_0001>

<bundles_post_ra>
// kernel: tpu_custom_call.1
= control target key start
LH: loop header
LB: loop body
LE: loop exit
PB: predicated region body
PF: predicated region fallthrough
CT: control target
= control target key end

     0   :  { %7 = vsyncpa [#allocation3], 0  ;;  %s1206_s0 = inlined_call_operand.hbm [shape: f32[256,1024], index: 0, kind: input, shape index: {}]   ;;  %s1207_s1 = inlined_call_operand.vmem [shape: f32[2], index: 1, kind: input, shape index: {}]   ;;  %s1208_s2 = inlined_call_operand.hbm [shape: f32[256,1024], index: 2, kind: output, shape index: {}]  }
   0x1   :  { %9 = vsyncpa [#allocation3 + $0x1], 0 }
   0x2   :  { %10 = vsyncpa [#allocation5], 0 }
   0x3   :  { %11 = vsyncpa [#allocation4], 0 }
   0x4   :  { %13 = vsyncpa [#allocation4 + $0x1], 0  ;;  %s758_s9 = smov 0   ;;  %s760_s10 = smov 0  }
   0x5   :  { %s762_s11 = smov 0   ;;  %s764_s12 = smov 0  }
   0x6 LB: > { %s779_s13 = sadd.s32 4294967295, %s734_s12   ;;  %s539_s14 = sadd.s32 4294967294, %s734_s12   ;;  %s734_s12 = sphi %s764_s12, %s1229_s12   ;;  %s730_s11 = sphi %s762_s11, %s1228_s11   ;;  %s726_s10 = sphi %s760_s10, %s1227_s10   ;;  %s722_s9 = sphi %s758_s9, %s1226_s9  }
   0x7   : > { %s783_s15 = sadd.s32 1, %s734_s12   ;;  %s26_s16 = sadd.s32 1, %s730_s11 }
   0x8   : > { %s23_s17 = ssub.s32 %s734_s12, %s783_s15  ;;  %p33_p0 = scmp.ne.s32.totalorder %s730_s11, %s726_s10 }
   0x9   : > { %p24_p1 = scmp.eq.s32.totalorder %s23_s17, 0  ;;  %p34_p2 = scmp.eq.s32.totalorder %s734_s12, 0 }
   0xa   : > { %p39_p3 = scmp.ne.s32.totalorder %s726_s10, %s722_s9  ;;  %p1210_p4 = scmp.eq.s32.totalorder %s779_s13, 0 }
   0xb   : > { %s795_s18 = scalar_select %p24_p1, %s730_s11, %s26_s16  }
   0xc   : > { %p797_p5 = por %p34_p2, %p33_p0  ;;  %p803_p6 = por %p1210_p4, %p39_p3 }
   0xd   : > { %p84_p7 = scmp.eq.s32.totalorder %s779_s13, 3  ;;  %p90_p8 = scmp.eq.s32.totalorder %s539_s14, 3 }
   0xe   : > { %s1214_s20 = scalar_select %p803_p6, 1, 0 }
   0xf   : > { %p540_p9 = scmp.ge.s32.totalorder %s734_s12, 1  ;;  %p97_p10 = scmp.lt.s32.totalorder %s734_s12, 5 }
  0x10   : > { %p810_p11 = por %p84_p7, %p33_p0  ;;  %p814_p12 = por %p90_p8, %p39_p3 }
  0x11   : > { %p818_p13 = pnand %p540_p9, %p97_p10  ;;  %s110_s26 = sshll.u32 %s1207_s1, 4  ;;  %s111_s26 = int_to_ptr.vmem [resolvable:$true] %s110_s26 }
  0x12   : > { %s1215_s21 = scalar_select %p810_p11, 1, 0 }
  0x13   : > { %s1216_s22 = scalar_select %p814_p12, 1, 0 }
  0x14   : > { %s1217_s23 = scalar_select %p818_p13, 1, 0 }
  0x15   : > { %p570_p1 = pneg %p818_p13  ;;  %p583_p0 = scmp.lt.s32.totalorder %s734_s12, 4 }
  0x16   : > { %s121_s28 = sand.u32 1, %s730_s11   ;;  %s623_s3 = scalar_lea.vmem %s111_s26, 16 }
  0x17   : > { %p830_p2 = pnand %p570_p1, %p1210_p4  ;;  %p837_p3 = pnand %p583_p0, %p797_p5 }
  0x18   : > { %s543_s30 = sshll.u32 %s121_s28, 9  ;;  %p624_p7 = scmp.ne.s32.totalorder %s111_s26, %s623_s3 }
  0x19   : > { %p625_p8 = pneg %p830_p2  ;;  %p631_p12 = scmp.lt.s32.totalorder %s111_s26, %s111_s26 }
  0x1a   : > { %p632_p11 = scmp.lt.s32.totalorder %s623_s3, %s623_s3 }
  0x1b   : > { %p626_p9 = pnand %p625_p8, %p624_p7 }
  0x1c   : > { %p633_p1 = por %p632_p11, %p631_p12 }
  0x1d   : > { %p627_p10 = pneg %p626_p9 }
  0x1f   : > { %p634_p4 = pnand %p633_p1, %p627_p10 }
  0x21   : > { %637 = shalt.err (!%p634_p4)
}
  0x22   : > { %s736_s4 = smov [#allocation6]   ;;  %s559_s5 = sshll.u32 %s734_s12, 13 }
  0x23   : > { %573 = dma.vmem_to_smem (!%p830_p2), %s111_s26, 16, %s736_s4, [#allocation5]  }
  0x24   : > { %s125_s6 = scalar_lea.vmem [#allocation2], %s543_s30  ;;  %s849_s16 = scalar_lea.hbm %s1206_s0, %s559_s5 }
  0x25   : > { %s133_s7 = sshll.u32 %s125_s6, 4  ;;  %s853_s17 = scalar_lea.sflag [#allocation3], %s121_s28  ;;  %s851_s7 = int_to_ptr.vmem [resolvable:$true] %s133_s7 }
  0x26   : > { %s638_s19 = scalar_lea.hbm %s849_s16, 8192  ;;  %p640_p5 = pneg %p837_p3 }
  0x27   : > { %p639_p4 = scmp.ne.s32.totalorder %s849_s16, %s638_s19  ;;  %s643_s26 = scalar_lea.hbm %s1206_s0, 32768 }
  0x28   : > { %p644_p0 = scmp.lt.s32.totalorder %s849_s16, %s1206_s0  ;;  %p645_p2 = scmp.lt.s32.totalorder %s643_s26, %s638_s19 }
  0x29   : > { %p641_p11 = pnand %p640_p5, %p639_p4 }
  0x2a   : > { %p646_p7 = por %p645_p2, %p644_p0 }
  0x2b   : > { %p642_p12 = pneg %p641_p11 }
  0x2d   : > { %p647_p8 = pnand %p646_p7, %p642_p12 }
  0x2f   : > { %650 = shalt.err (!%p647_p8)
}
  0x30   : > { %s651_s28 = scalar_lea.vmem %s851_s7, 8192  ;;  %s737_s3 = smov [#allocation2]  }
  0x31   : > { %p652_p9 = scmp.ne.s32.totalorder %s851_s7, %s651_s28  ;;  %s656_s4 = sshll.u32 %s737_s3, 4  ;;  %s657_s4 = int_to_ptr.vmem [resolvable:$false] %s656_s4 }
  0x32   : > { %s658_s5 = scalar_lea.vmem %s657_s4, 16384  ;;  %p659_p4 = scmp.lt.s32.totalorder %s851_s7, %s657_s4 }
  0x33   : > { %p654_p10 = pnand %p652_p9, %p640_p5  ;;  %p660_p11 = scmp.lt.s32.totalorder %s658_s5, %s651_s28 }
  0x35   : > { %p655_p1 = pneg %p654_p10  ;;  %p661_p6 = por %p660_p11, %p659_p4 }
  0x37   : > { %p662_p13 = pnand %p661_p6, %p655_p1 }
  0x39   : > { %665 = shalt.err (!%p662_p13)
}
  0x3a   : > { %s738_s6 = smov 1024   ;;  %s739_s8 = smov 64  }
  0x3b   : > { %577 = dma.hbm_to_vmem [thread:$0]  (!%p837_p3), %s849_s16, 8192, %s851_s7, %s853_s17, %s738_s6, %s738_s6, %s739_s8  }
  0x3c   : > { %p1220_p5 = scmp.ne.s32.totalorder %s1217_s23, 0 }
  0x3d   : > { %s877_s14 = sand.u32 (!%p1220_p5), 1, %s726_s10   ;;  %p1221_p6 = scmp.ne.s32.totalorder (!%p1220_p5), %s1214_s20, 0 }
  0x3e   : > { %145 = sbr.rel (%p1220_p5) target bundleno = 136 (0x88), region = 28  ;;  %s548_s19 = sshll.u32 (!%p1220_p5), %s877_s14, 9 }
  0x3f   : > { %s148_s24 = scalar_lea.sflag (!%p1220_p5), [#allocation3], %s877_s14  ;;  %s883_s25 = scalar_lea.vmem (!%p1220_p5), [#allocation2], %s548_s19 }
  0x43   : > { %709 = dma.done.wait (%p1221_p6), %s148_s24, 8192  }
  0x44   : > { %711 = vsyncadd (%p1221_p6), %s148_s24, 4294959104  ;;  %p1222_p13 = scmp.eq.s32.totalorder %s779_s13, 0 }
  0x46   : > { %713 = dma.done.wait (%p1222_p13), [#allocation5], 16   ;;  %p1223_p3 = pmov %p1222_p13 }
  0x48   : > { %715 = vsyncadd (%p1223_p3), [#allocation5], 4294967280 }
  0x49   : > { %160 = sfence }
  0x4a   : > { %s243_s23 = sld [smem:[#allocation6]]  ;;  %v179_v0 = vld [vmem:[%s883_s25] sm:$0xff]  ;;  %v180_v1 = vld [vmem:[%s883_s25 + $0x8] sm:$0xff]  ;;  %v181_v2 = vld [vmem:[%s883_s25 + $0x10] sm:$0xff]  ;;  %s930_s20 = scalar_lea.vmem [#allocation7], %s548_s19 }
  0x4b   : > { %s551_s29 = sld [smem:[#allocation6 + $0x1]]  ;;  %v182_v3 = vld [vmem:[%s883_s25 + $0x18] sm:$0xff]  ;;  %v183_v4 = vld [vmem:[%s883_s25 + $0x20] sm:$0xff]  ;;  %v184_v5 = vld [vmem:[%s883_s25 + $0x28] sm:$0xff]  ;;  %s561_s7 = sshll.u32 %s779_s13, 13 }
  0x4c   : > { %v185_v6 = vld [vmem:[%s883_s25 + $0x30] sm:$0xff]  ;;  %v186_v8 = vld [vmem:[%s883_s25 + $0x38] sm:$0xff]  ;;  %v187_v13 = vld [vmem:[%s883_s25 + $0x40] sm:$0xff]  ;;  %s454_s16 = sshll.u32 %s930_s20, 4  ;;  %s1153_s26 = scalar_lea.hbm %s1208_s2, %s561_s7  ;;  %s1155_s16 = int_to_ptr.vmem [resolvable:$true] %s454_s16 }
  0x4d   : > { %v188_v18 = vld [vmem:[%s883_s25 + $0x48] sm:$0xff]  ;;  %v189_v19 = vld [vmem:[%s883_s25 + $0x50] sm:$0xff]  ;;  %v190_v20 = vld [vmem:[%s883_s25 + $0x58] sm:$0xff]  ;;  %s440_s27 = scalar_lea.sflag [#allocation4], %s877_s14  ;;  %s666_s30 = scalar_lea.vmem %s1155_s16, 8192 }
  0x4e   : > { %v191_v25 = vld [vmem:[%s883_s25 + $0x60] sm:$0xff]  ;;  %v192_v26 = vld [vmem:[%s883_s25 + $0x68] sm:$0xff]  ;;  %v193_v27 = vld [vmem:[%s883_s25 + $0x70] sm:$0xff]  ;;  %p667_p12 = scmp.ne.s32.totalorder %s1155_s16, %s666_s30  ;;  %p1224_p0 = scmp.ne.s32.totalorder %s1215_s21, 0 }
  0x4f   : > { %v194_v32 = vld [vmem:[%s883_s25 + $0x78] sm:$0xff]  ;;  %v195_v37 = vld [vmem:[%s883_s25 + $0x80] sm:$0xff]  ;;  %v196_v42 = vld [vmem:[%s883_s25 + $0x88] sm:$0xff]  ;;  %s740_s28 = smov [#allocation7]  }
  0x50   : > { %v900_v7 = vstv %s243_s23  ;;  %v197_v43 = vld [vmem:[%s883_s25 + $0x90] sm:$0xff]  ;;  %v198_v44 = vld [vmem:[%s883_s25 + $0x98] sm:$0xff]  ;;  %v199_v49 = vld [vmem:[%s883_s25 + $0xa0] sm:$0xff]  ;;  %p668_p2 = pnand %p667_p12, %p1224_p0  ;;  %s670_s3 = sshll.u32 %s740_s28, 4  ;;  %s671_s3 = int_to_ptr.vmem [resolvable:$false] %s670_s3 }
  0x51   : > { %v245_v9 = vmul.f32 %v900_v7, %v179_v0  ;;  %v904_v10 = vstv %s551_s29  ;;  %v246_v11 = vmul.f32 %v900_v7, %v180_v1  ;;  %v247_v12 = vmul.f32 %v900_v7, %v181_v2  ;;  %v200_v50 = vld [vmem:[%s883_s25 + $0xa8] sm:$0xff]  ;;  %v201_v51 = vld [vmem:[%s883_s25 + $0xb0] sm:$0xff]  ;;  %v202_v56 = vld [vmem:[%s883_s25 + $0xb8] sm:$0xff]  ;;  %s672_s4 = scalar_lea.vmem %s671_s3, 16384  ;;  %p673_p8 = scmp.lt.s32.totalorder %s1155_s16, %s671_s3 }
  0x52   : > { %v248_v14 = vmul.f32 %v900_v7, %v182_v3  ;;  %v249_v15 = vmul.f32 %v900_v7, %v183_v4  ;;  %v250_v16 = vmul.f32 %v900_v7, %v184_v5  ;;  %v251_v17 = vmul.f32 %v900_v7, %v185_v6  ;;  %v203_v61 = vld [vmem:[%s883_s25 + $0xc0] sm:$0xff]  ;;  %v204_v2 = vld [vmem:[%s883_s25 + $0xc8] sm:$0xff]  ;;  %v205_v3 = vld [vmem:[%s883_s25 + $0xd0] sm:$0xff]  ;;  %p669_p7 = pneg %p668_p2  ;;  %p674_p9 = scmp.lt.s32.totalorder %s672_s4, %s666_s30 }
  0x53   : > { %v311_v21 = vadd.f32 %v904_v10, %v245_v9  ;;  %v312_v22 = vadd.f32 %v904_v10, %v246_v11  ;;  %v313_v23 = vadd.f32 %v904_v10, %v247_v12  ;;  %v252_v24 = vmul.f32 %v900_v7, %v186_v8  ;;  %v206_v4 = vld [vmem:[%s883_s25 + $0xd8] sm:$0xff]  ;;  %v207_v11 = vld [vmem:[%s883_s25 + $0xe0] sm:$0xff]  ;;  %v208_v12 = vld [vmem:[%s883_s25 + $0xe8] sm:$0xff] }
  0x54   : > { %v314_v28 = vadd.f32 %v904_v10, %v248_v14  ;;  %v315_v29 = vadd.f32 %v904_v10, %v249_v15  ;;  %v316_v30 = vadd.f32 %v904_v10, %v250_v16  ;;  %v317_v31 = vadd.f32 %v904_v10, %v251_v17  ;;  %p675_p10 = por %p674_p9, %p673_p8 }
  0x55   : > { %375 = vst [vmem:[%s930_s20] sm:$0xff] %v311_v21  ;;  %376 = vst [vmem:[%s930_s20 + $0x8] sm:$0xff] %v312_v22  ;;  %v318_v33 = vadd.f32 %v904_v10, %v252_v24  ;;  %v253_v34 = vmul.f32 %v900_v7, %v187_v13  ;;  %v254_v35 = vmul.f32 %v900_v7, %v188_v18  ;;  %v209_v13 = vld [vmem:[%s883_s25 + $0xf0] sm:$0xff]  ;;  %v210_v18 = vld [vmem:[%s883_s25 + $0xf8] sm:$0xff] }
  0x56   : > { %377 = vst [vmem:[%s930_s20 + $0x10] sm:$0xff] %v313_v23  ;;  %v255_v36 = vmul.f32 %v900_v7, %v189_v19  ;;  %378 = vst [vmem:[%s930_s20 + $0x18] sm:$0xff] %v314_v28  ;;  %v256_v38 = vmul.f32 %v900_v7, %v190_v20  ;;  %v257_v39 = vmul.f32 %v900_v7, %v191_v25  ;;  %v211_v23 = vld [vmem:[%s883_s25 + $0x100] sm:$0xff]  ;;  %v212_v28 = vld [vmem:[%s883_s25 + $0x108] sm:$0xff]  ;;  %p676_p1 = pnand %p675_p10, %p669_p7 }
  0x57   : > { %379 = vst [vmem:[%s930_s20 + $0x20] sm:$0xff] %v315_v29  ;;  %380 = vst [vmem:[%s930_s20 + $0x28] sm:$0xff] %v316_v30  ;;  %v258_v40 = vmul.f32 %v900_v7, %v192_v26  ;;  %v259_v41 = vmul.f32 %v900_v7, %v193_v27  ;;  %v319_v45 = vadd.f32 %v904_v10, %v253_v34  ;;  %v213_v29 = vld [vmem:[%s883_s25 + $0x110] sm:$0xff]  ;;  %v214_v30 = vld [vmem:[%s883_s25 + $0x118] sm:$0xff] }
  0x58   : > { %381 = vst [vmem:[%s930_s20 + $0x30] sm:$0xff] %v317_v31  ;;  %382 = vst [vmem:[%s930_s20 + $0x38] sm:$0xff] %v318_v33  ;;  %v320_v46 = vadd.f32 %v904_v10, %v254_v35  ;;  %v321_v47 = vadd.f32 %v904_v10, %v255_v36  ;;  %v260_v48 = vmul.f32 %v900_v7, %v194_v32  ;;  %v215_v35 = vld [vmem:[%s883_s25 + $0x120] sm:$0xff]  ;;  %v216_v36 = vld [vmem:[%s883_s25 + $0x128] sm:$0xff] }
  0x59   : > { %v322_v52 = vadd.f32 %v904_v10, %v256_v38  ;;  %v323_v53 = vadd.f32 %v904_v10, %v257_v39  ;;  %v324_v54 = vadd.f32 %v904_v10, %v258_v40  ;;  %v325_v55 = vadd.f32 %v904_v10, %v259_v41  ;;  %383 = vst [vmem:[%s930_s20 + $0x40] sm:$0xff] %v319_v45 }
  0x5a   : > { %384 = vst [vmem:[%s930_s20 + $0x48] sm:$0xff] %v320_v46  ;;  %385 = vst [vmem:[%s930_s20 + $0x50] sm:$0xff] %v321_v47  ;;  %v326_v57 = vadd.f32 %v904_v10, %v260_v48  ;;  %v261_v58 = vmul.f32 %v900_v7, %v195_v37  ;;  %v262_v59 = vmul.f32 %v900_v7, %v196_v42  ;;  %v217_v37 = vld [vmem:[%s883_s25 + $0x130] sm:$0xff]  ;;  %v218_v42 = vld [vmem:[%s883_s25 + $0x138] sm:$0xff] }
  0x5b   : > { %v263_v60 = vmul.f32 %v900_v7, %v197_v43  ;;  %386 = vst [vmem:[%s930_s20 + $0x58] sm:$0xff] %v322_v52  ;;  %387 = vst [vmem:[%s930_s20 + $0x60] sm:$0xff] %v323_v53  ;;  %v264_v62 = vmul.f32 %v900_v7, %v198_v44  ;;  %v265_v63 = vmul.f32 %v900_v7, %v199_v49  ;;  %v219_v47 = vld [vmem:[%s883_s25 + $0x140] sm:$0xff]  ;;  %v220_v52 = vld [vmem:[%s883_s25 + $0x148] sm:$0xff] }
  0x5c   : > { %388 = vst [vmem:[%s930_s20 + $0x68] sm:$0xff] %v324_v54  ;;  %389 = vst [vmem:[%s930_s20 + $0x70] sm:$0xff] %v325_v55  ;;  %v266_v0 = vmul.f32 %v900_v7, %v200_v50  ;;  %v267_v1 = vmul.f32 %v900_v7, %v201_v51  ;;  %v327_v5 = vadd.f32 %v904_v10, %v261_v58  ;;  %v221_v53 = vld [vmem:[%s883_s25 + $0x150] sm:$0xff]  ;;  %v222_v54 = vld [vmem:[%s883_s25 + $0x158] sm:$0xff] }
  0x5d   : > { %390 = vst [vmem:[%s930_s20 + $0x78] sm:$0xff] %v326_v57  ;;  %v328_v6 = vadd.f32 %v904_v10, %v262_v59  ;;  %v329_v8 = vadd.f32 %v904_v10, %v263_v60  ;;  %v268_v9 = vmul.f32 %v900_v7, %v202_v56  ;;  %v330_v14 = vadd.f32 %v904_v10, %v264_v62  ;;  %v223_v59 = vld [vmem:[%s883_s25 + $0x160] sm:$0xff]  ;;  %v224_v60 = vld [vmem:[%s883_s25 + $0x168] sm:$0xff] }
  0x5e   : > { %v331_v15 = vadd.f32 %v904_v10, %v265_v63  ;;  %v332_v16 = vadd.f32 %v904_v10, %v266_v0  ;;  %v333_v17 = vadd.f32 %v904_v10, %v267_v1  ;;  %391 = vst [vmem:[%s930_s20 + $0x80] sm:$0xff] %v327_v5  ;;  %v269_v20 = vmul.f32 %v900_v7, %v203_v61  ;;  %v225_v61 = vld [vmem:[%s883_s25 + $0x170] sm:$0xff] }
  0x5f   : > { %392 = vst [vmem:[%s930_s20 + $0x88] sm:$0xff] %v328_v6  ;;  %393 = vst [vmem:[%s930_s20 + $0x90] sm:$0xff] %v329_v8  ;;  %v334_v19 = vadd.f32 %v904_v10, %v268_v9  ;;  %v270_v21 = vmul.f32 %v900_v7, %v204_v2  ;;  %v271_v22 = vmul.f32 %v900_v7, %v205_v3  ;;  %v226_v2 = vld [vmem:[%s883_s25 + $0x178] sm:$0xff]  ;;  %v227_v8 = vld [vmem:[%s883_s25 + $0x180] sm:$0xff] }
  0x60   : > { %394 = vst [vmem:[%s930_s20 + $0x98] sm:$0xff] %v330_v14  ;;  %395 = vst [vmem:[%s930_s20 + $0xa0] sm:$0xff] %v331_v15  ;;  %v272_v24 = vmul.f32 %v900_v7, %v206_v4  ;;  %v273_v25 = vmul.f32 %v900_v7, %v207_v11  ;;  %v274_v26 = vmul.f32 %v900_v7, %v208_v12  ;;  %v228_v14 = vld [vmem:[%s883_s25 + $0x188] sm:$0xff]  ;;  %v229_v15 = vld [vmem:[%s883_s25 + $0x190] sm:$0xff] }
  0x61   : > { %396 = vst [vmem:[%s930_s20 + $0xa8] sm:$0xff] %v332_v16  ;;  %397 = vst [vmem:[%s930_s20 + $0xb0] sm:$0xff] %v333_v17  ;;  %v275_v27 = vmul.f32 %v900_v7, %v209_v13  ;;  %v335_v31 = vadd.f32 %v904_v10, %v269_v20  ;;  %v336_v32 = vadd.f32 %v904_v10, %v270_v21  ;;  %v230_v16 = vld [vmem:[%s883_s25 + $0x198] sm:$0xff]  ;;  %v231_v21 = vld [vmem:[%s883_s25 + $0x1a0] sm:$0xff] }
  0x62   : > { %398 = vst [vmem:[%s930_s20 + $0xb8] sm:$0xff] %v334_v19  ;;  %v337_v33 = vadd.f32 %v904_v10, %v271_v22  ;;  %v276_v34 = vmul.f32 %v900_v7, %v210_v18  ;;  %v338_v38 = vadd.f32 %v904_v10, %v272_v24  ;;  %v339_v39 = vadd.f32 %v904_v10, %v273_v25  ;;  %v232_v22 = vld [vmem:[%s883_s25 + $0x1a8] sm:$0xff] }
  0x63   : > { %v340_v40 = vadd.f32 %v904_v10, %v274_v26  ;;  %v341_v41 = vadd.f32 %v904_v10, %v275_v27  ;;  %399 = vst [vmem:[%s930_s20 + $0xc0] sm:$0xff] %v335_v31  ;;  %400 = vst [vmem:[%s930_s20 + $0xc8] sm:$0xff] %v336_v32  ;;  %v277_v44 = vmul.f32 %v900_v7, %v211_v23  ;;  %v233_v23 = vld [vmem:[%s883_s25 + $0x1b0] sm:$0xff] }
  0x64   : > { %401 = vst [vmem:[%s930_s20 + $0xd0] sm:$0xff] %v337_v33  ;;  %v342_v43 = vadd.f32 %v904_v10, %v276_v34  ;;  %v278_v45 = vmul.f32 %v900_v7, %v212_v28  ;;  %v279_v46 = vmul.f32 %v900_v7, %v213_v29  ;;  %402 = vst [vmem:[%s930_s20 + $0xd8] sm:$0xff] %v338_v38  ;;  %v234_v28 = vld [vmem:[%s883_s25 + $0x1b8] sm:$0xff]  ;;  %v235_v33 = vld [vmem:[%s883_s25 + $0x1c0] sm:$0xff] }
  0x65   : > { %403 = vst [vmem:[%s930_s20 + $0xe0] sm:$0xff] %v339_v39  ;;  %404 = vst [vmem:[%s930_s20 + $0xe8] sm:$0xff] %v340_v40  ;;  %v280_v48 = vmul.f32 %v900_v7, %v214_v30  ;;  %v281_v49 = vmul.f32 %v900_v7, %v215_v35  ;;  %v282_v50 = vmul.f32 %v900_v7, %v216_v36  ;;  %v236_v38 = vld [vmem:[%s883_s25 + $0x1c8] sm:$0xff]  ;;  %v237_v39 = vld [vmem:[%s883_s25 + $0x1d0] sm:$0xff] }
  0x66   : > { %405 = vst [vmem:[%s930_s20 + $0xf0] sm:$0xff] %v341_v41  ;;  %v283_v51 = vmul.f32 %v900_v7, %v217_v37  ;;  %406 = vst [vmem:[%s930_s20 + $0xf8] sm:$0xff] %v342_v43  ;;  %v343_v55 = vadd.f32 %v904_v10, %v277_v44  ;;  %v344_v56 = vadd.f32 %v904_v10, %v278_v45  ;;  %v238_v40 = vld [vmem:[%s883_s25 + $0x1d8] sm:$0xff]  ;;  %v239_v45 = vld [vmem:[%s883_s25 + $0x1e0] sm:$0xff] }
  0x67   : > { %v345_v57 = vadd.f32 %v904_v10, %v279_v46  ;;  %v284_v58 = vmul.f32 %v900_v7, %v218_v42  ;;  %v346_v62 = vadd.f32 %v904_v10, %v280_v48  ;;  %v347_v63 = vadd.f32 %v904_v10, %v281_v49  ;;  %v240_v46 = vld [vmem:[%s883_s25 + $0x1e8] sm:$0xff] }
  0x68   : > { %v348_v0 = vadd.f32 %v904_v10, %v282_v50  ;;  %v349_v1 = vadd.f32 %v904_v10, %v283_v51  ;;  %407 = vst [vmem:[%s930_s20 + $0x100] sm:$0xff] %v343_v55  ;;  %408 = vst [vmem:[%s930_s20 + $0x108] sm:$0xff] %v344_v56  ;;  %v285_v4 = vmul.f32 %v900_v7, %v219_v47  ;;  %v241_v47 = vld [vmem:[%s883_s25 + $0x1f0] sm:$0xff] }
  0x69   : > { %409 = vst [vmem:[%s930_s20 + $0x110] sm:$0xff] %v345_v57  ;;  %v350_v3 = vadd.f32 %v904_v10, %v284_v58  ;;  %v286_v5 = vmul.f32 %v900_v7, %v220_v52  ;;  %v287_v6 = vmul.f32 %v900_v7, %v221_v53  ;;  %410 = vst [vmem:[%s930_s20 + $0x118] sm:$0xff] %v346_v62  ;;  %v242_v52 = vld [vmem:[%s883_s25 + $0x1f8] sm:$0xff] }
  0x6a   : > { %411 = vst [vmem:[%s930_s20 + $0x120] sm:$0xff] %v347_v63  ;;  %412 = vst [vmem:[%s930_s20 + $0x128] sm:$0xff] %v348_v0  ;;  %v288_v9 = vmul.f32 %v900_v7, %v222_v54  ;;  %v289_v11 = vmul.f32 %v900_v7, %v223_v59  ;;  %v290_v12 = vmul.f32 %v900_v7, %v224_v60 }
  0x6b   : > { %413 = vst [vmem:[%s930_s20 + $0x130] sm:$0xff] %v349_v1  ;;  %v291_v13 = vmul.f32 %v900_v7, %v225_v61  ;;  %414 = vst [vmem:[%s930_s20 + $0x138] sm:$0xff] %v350_v3  ;;  %v351_v17 = vadd.f32 %v904_v10, %v285_v4  ;;  %v352_v18 = vadd.f32 %v904_v10, %v286_v5 }
  0x6c   : > { %v353_v19 = vadd.f32 %v904_v10, %v287_v6  ;;  %v292_v20 = vmul.f32 %v900_v7, %v226_v2  ;;  %v354_v24 = vadd.f32 %v904_v10, %v288_v9  ;;  %v355_v25 = vadd.f32 %v904_v10, %v289_v11 }
  0x6d   : > { %v356_v26 = vadd.f32 %v904_v10, %v290_v12  ;;  %v357_v27 = vadd.f32 %v904_v10, %v291_v13  ;;  %415 = vst [vmem:[%s930_s20 + $0x140] sm:$0xff] %v351_v17  ;;  %416 = vst [vmem:[%s930_s20 + $0x148] sm:$0xff] %v352_v18  ;;  %v293_v30 = vmul.f32 %v900_v7, %v227_v8 }
  0x6e   : > { %417 = vst [vmem:[%s930_s20 + $0x150] sm:$0xff] %v353_v19  ;;  %v358_v29 = vadd.f32 %v904_v10, %v292_v20  ;;  %v294_v31 = vmul.f32 %v900_v7, %v228_v14  ;;  %v295_v32 = vmul.f32 %v900_v7, %v229_v15  ;;  %418 = vst [vmem:[%s930_s20 + $0x158] sm:$0xff] %v354_v24 }
  0x6f   : > { %419 = vst [vmem:[%s930_s20 + $0x160] sm:$0xff] %v355_v25  ;;  %420 = vst [vmem:[%s930_s20 + $0x168] sm:$0xff] %v356_v26  ;;  %v296_v34 = vmul.f32 %v900_v7, %v230_v16  ;;  %v297_v35 = vmul.f32 %v900_v7, %v231_v21  ;;  %v298_v36 = vmul.f32 %v900_v7, %v232_v22 }
  0x70   : > { %421 = vst [vmem:[%s930_s20 + $0x170] sm:$0xff] %v357_v27  ;;  %v299_v37 = vmul.f32 %v900_v7, %v233_v23  ;;  %422 = vst [vmem:[%s930_s20 + $0x178] sm:$0xff] %v358_v29  ;;  %v359_v41 = vadd.f32 %v904_v10, %v293_v30  ;;  %v360_v42 = vadd.f32 %v904_v10, %v294_v31 }
  0x71   : > { %v361_v43 = vadd.f32 %v904_v10, %v295_v32  ;;  %v300_v44 = vmul.f32 %v900_v7, %v234_v28  ;;  %v362_v48 = vadd.f32 %v904_v10, %v296_v34  ;;  %v363_v49 = vadd.f32 %v904_v10, %v297_v35 }
  0x72   : > { %v364_v50 = vadd.f32 %v904_v10, %v298_v36  ;;  %v365_v51 = vadd.f32 %v904_v10, %v299_v37  ;;  %423 = vst [vmem:[%s930_s20 + $0x180] sm:$0xff] %v359_v41  ;;  %424 = vst [vmem:[%s930_s20 + $0x188] sm:$0xff] %v360_v42  ;;  %v301_v54 = vmul.f32 %v900_v7, %v235_v33 }
  0x73   : > { %425 = vst [vmem:[%s930_s20 + $0x190] sm:$0xff] %v361_v43  ;;  %v366_v53 = vadd.f32 %v904_v10, %v300_v44  ;;  %v302_v55 = vmul.f32 %v900_v7, %v236_v38  ;;  %v303_v56 = vmul.f32 %v900_v7, %v237_v39  ;;  %426 = vst [vmem:[%s930_s20 + $0x198] sm:$0xff] %v362_v48 }
  0x74   : > { %427 = vst [vmem:[%s930_s20 + $0x1a0] sm:$0xff] %v363_v49  ;;  %428 = vst [vmem:[%s930_s20 + $0x1a8] sm:$0xff] %v364_v50  ;;  %v304_v57 = vmul.f32 %v900_v7, %v238_v40  ;;  %v305_v58 = vmul.f32 %v900_v7, %v239_v45  ;;  %v306_v59 = vmul.f32 %v900_v7, %v240_v46 }
  0x75   : > { %429 = vst [vmem:[%s930_s20 + $0x1b0] sm:$0xff] %v365_v51  ;;  %v307_v60 = vmul.f32 %v900_v7, %v241_v47  ;;  %430 = vst [vmem:[%s930_s20 + $0x1b8] sm:$0xff] %v366_v53  ;;  %v367_v61 = vadd.f32 %v904_v10, %v301_v54  ;;  %v368_v62 = vadd.f32 %v904_v10, %v302_v55 }
  0x76   : > { %v369_v63 = vadd.f32 %v904_v10, %v303_v56  ;;  %v308_v0 = vmul.f32 %v900_v7, %v242_v52  ;;  %v370_v1 = vadd.f32 %v904_v10, %v304_v57  ;;  %v371_v2 = vadd.f32 %v904_v10, %v305_v58 }
  0x77   : > { %v372_v3 = vadd.f32 %v904_v10, %v306_v59  ;;  %v373_v4 = vadd.f32 %v904_v10, %v307_v60  ;;  %431 = vst [vmem:[%s930_s20 + $0x1c0] sm:$0xff] %v367_v61  ;;  %432 = vst [vmem:[%s930_s20 + $0x1c8] sm:$0xff] %v368_v62 }
  0x78   : > { %433 = vst [vmem:[%s930_s20 + $0x1d0] sm:$0xff] %v369_v63  ;;  %v374_v7 = vadd.f32 %v904_v10, %v308_v0  ;;  %434 = vst [vmem:[%s930_s20 + $0x1d8] sm:$0xff] %v370_v1 }
  0x79   : > { %435 = vst [vmem:[%s930_s20 + $0x1e0] sm:$0xff] %v371_v2  ;;  %436 = vst [vmem:[%s930_s20 + $0x1e8] sm:$0xff] %v372_v3 }
  0x7a   : > { %437 = vst [vmem:[%s930_s20 + $0x1f0] sm:$0xff] %v373_v4  ;;  %438 = vst [vmem:[%s930_s20 + $0x1f8] sm:$0xff] %v374_v7 }
  0x7b   : > { %679 = shalt.err (!%p676_p1)
}
  0x7c   : > { %s680_s5 = scalar_lea.hbm %s1153_s26, 8192  ;;  %s684_s19 = scalar_lea.hbm %s1208_s2, 32768 }
  0x7d   : > { %p681_p4 = scmp.ne.s32.totalorder %s1153_s26, %s680_s5  ;;  %p685_p6 = scmp.lt.s32.totalorder %s1153_s26, %s1208_s2 }
  0x7e   : > { %p686_p13 = scmp.lt.s32.totalorder %s684_s19, %s680_s5 }
  0x7f   : > { %p682_p11 = pnand %p681_p4, %p1224_p0 }
  0x80   : > { %p687_p3 = por %p686_p13, %p685_p6 }
  0x81   : > { %p683_p5 = pneg %p682_p11 }
  0x83   : > { %p688_p12 = pnand %p687_p3, %p683_p5 }
  0x85   : > { %691 = shalt.err (!%p688_p12)
}
  0x86   : > { %s741_s23 = smov 1024   ;;  %s742_s29 = smov 64  }
  0x87   : > { %568 = dma.vmem_to_hbm [thread:$0]  (%p1224_p0), %s1155_s16, 8192, %s1153_s26, %s440_s27, %s741_s23, %s741_s23, %s742_s29  }
  0x88 PF: > { %p585_p2 = scmp.ge.s32.totalorder %s734_s12, 2  ;;  %s469_s20 = sand.u32 1, %s722_s9  }
  0x89   : > { %p1225_p7 = scmp.ne.s32.totalorder %s1216_s22, 0  ;;  %s470_s7 = scalar_lea.sflag [#allocation4], %s469_s20 }
  0x8b   : > { %p579_p8 = pnand %p585_p2, %p1225_p7 }
  0x8d   : > { %p580_p9 = pneg %p579_p8 }
  0x8f   : > { %717 = dma.done.wait (%p580_p9), %s470_s7, 8192  }
  0x90   : > { %719 = vsyncadd (%p580_p9), %s470_s7, 4294959104  ;;  %p16_p10 = scmp.ge.s32.totalorder %s783_s15, 6   ;;  %s1226_s9 = smov %s726_s10 }
  0x91   : > { %s1227_s10 = smov %s730_s11  ;;  %s1228_s11 = smov %s795_s18 }
  0x92   : > { %s1229_s12 = smov %s783_s15  ;;  %18 = sbr.rel (!%p16_p10) target bundleno = 6 (0x6), region = 78 }
  0x97   :  { %475 = vsyncpa [#allocation3], 1 }
  0x98   :  { %477 = vsyncpa [#allocation3 + $0x1], 1 }
  0x99   :  { %478 = vsyncpa [#allocation4], 1 }
  0x9a   :  { %480 = vsyncpa [#allocation4 + $0x1], 1 }
  0x9b   :  { %481 = vsyncpa [#allocation5], 1 }
  0x9c   :  { %483 = vsyncpa [#allocation5 + $0x1], 1 }

</bundles_post_ra>
